<compile_context>
chip_gen: v7x
topology: tpu7x:2x2x1
jax: 0.10.0
libtpu: 0.0.40
codegen_flags: <defaults>
</compile_context>

<pallas_src>
import math

import jax
import jax.numpy as jnp
import numpy as np
from jax.experimental import pallas as pl
from jax.experimental.pallas import tpu as pltpu


def _xlogx(p: float) -> float:
    return 0.0 if p <= 0.0 else p * math.log(p)


def _round_up(v: int, m: int) -> int:
    return ((v + m - 1) // m) * m


def _device_params():
    """Returns (num_cores, vmem_budget_bytes, vmem_limit_bytes_or_None)."""
    kind = ""
    try:
        kind = jax.devices()[0].device_kind.lower()
    except Exception:
        pass
    if "v7" in kind:
        # v7x: 2 TensorCores/chip, 64 MiB VMEM per TC.
        return 2, 20 * 1024 * 1024, 48 * 1024 * 1024
    if "v5" in kind or "v6" in kind:
        # v5e / v6e: 1 TC, 128 MiB VMEM -> far larger row tiles are fine.
        return 1, 56 * 1024 * 1024, 96 * 1024 * 1024
    # Unknown / older parts: conservative budget, keep compiler default limit.
    return 1, 12 * 1024 * 1024, None


def _pick_tile_n(n_rows: int, n_classes: int, itemsize: int,
                 budget_bytes: int) -> int:
    # Per-row VMEM: double-buffered native-dtype logits block (2*C*itemsize),
    # ~2 f32 full-width in-kernel temporaries (post reduction-fusion), plus the
    # lane-padded (tile_n,1) target double-buffer and two f32 accumulator
    # columns (~2 KiB/row).  Tile size is purely budget-driven (no 1024-row
    # cap); the 32768 ceiling only guards compile time.
    per_row = 2 * n_classes * itemsize + 2 * n_classes * 4 + 2048
    tile = budget_bytes // max(per_row, 1)
    tile = max(8, min(32768, tile))
    tile = min(tile, _round_up(n_rows, 8))
    return max(8, _round_up(tile, 8))


# ----------------------------------------------------------------------------
# Pallas kernel: masked label-smoothed-KL partial sums.  Grid is
# (num_cores ["parallel"], row_tiles_per_core ["arbitrary"]); each core keeps
# (tile_n, 1) VMEM accumulators and emits one partial-sum block at its last
# step; the wrapper adds the per-core partials.
# ----------------------------------------------------------------------------
def _make_ls_kernel(padding_idx: int, confidence: float, low: float,
                    const_term: float, n_rows: int, tile_n: int):
    def kernel(x_ref, t_ref, loss_ref, cnt_ref, lsum_acc, cnt_acc):
        c = pl.program_id(0)          # megacore shard
        i = pl.program_id(1)          # row-tile step within the shard

        @pl.when(i == 0)
        def _():
            lsum_acc[...] = jnp.zeros_like(lsum_acc)
            cnt_acc[...] = jnp.zeros_like(cnt_acc)

        # bf16 logits upcast in-register only (HBM traffic stays bf16-sized).
        logits = x_ref[...].astype(jnp.float32)          # (tile_n, C)
        tgt = t_ref[...]                                 # (tile_n, 1) int32

        # numerically stable logsumexp (2 lane reductions)
        m = jnp.max(logits, axis=-1, keepdims=True)
        lse = m + jnp.log(jnp.sum(jnp.exp(logits - m), axis=-1, keepdims=True))

        # Fused smoothed-KL row value: with w_c = confidence at the target and
        # low elsewhere (sum_c w_c == 1),
        #   KL(true_dist || softmax(x)) = const - sum_c w_c*logp_c
        #                               = const + lse - sum_c w_c*x_c
        # (relies on 0*log0 := 0 and sum(true_dist) == 1; matches torch KLDiv.)
        cls_ids = jax.lax.broadcasted_iota(jnp.int32, logits.shape, 1)
        w = jnp.where(cls_ids == tgt, confidence, low)
        wx = jnp.sum(w * logits, axis=-1, keepdims=True)
        per_row = const_term + lse - wx

        # Mask padded targets AND rows past the flattened input end: this also
        # zeroes the last partial tile's garbage rows (may hold NaN/Inf) and
        # any fully-duplicated clamped tiles on a short megacore shard.
        flat_step = c * pl.num_programs(1) + i
        row_id = flat_step * tile_n + jax.lax.broadcasted_iota(
            jnp.int32, tgt.shape, 0)
        valid = (tgt != padding_idx) & (row_id < n_rows)

        lsum_acc[...] += jnp.where(valid, per_row, 0.0)
        # f32 count is exact up to 2**24 valid rows (ample for loss shapes).
        cnt_acc[...] += valid.astype(jnp.float32)

        @pl.when(i == pl.num_programs(1) - 1)
        def _():
            ls = jnp.sum(lsum_acc[...], axis=(0, 1), keepdims=True)   # (1, 1)
            ct = jnp.sum(cnt_acc[...], axis=(0, 1), keepdims=True)
            loss_ref[...] = jnp.broadcast_to(ls[None], loss_ref.shape)
            cnt_ref[...] = jnp.broadcast_to(ct[None], cnt_ref.shape)

    return kernel


def _label_smoothing_sums(x2d, t1d, padding_idx, smoothing,
                          tile_n=None, num_cores=None):
    """Returns (sum of per-row smoothed-KL over valid rows, valid-row count)."""
    N, C = x2d.shape
    low = smoothing / (C - 1)
    confidence = 1.0 - smoothing
    const_term = _xlogx(confidence) + (C - 1) * _xlogx(low)

    dev_cores, budget, vmem_limit = _device_params()
    if num_cores is None:
        num_cores = dev_cores

    if tile_n is None:
        tile_n = _pick_tile_n(N, C, x2d.dtype.itemsize, budget)
    tile_n = max(8, _round_up(min(int(tile_n), _round_up(N, 8)), 8))

    n_blocks = pl.cdiv(N, tile_n)
    steps = pl.cdiv(n_blocks, num_cores)

    # (tile_n, 1) int32 targets: lane-narrow block, cost charged in the sizer.
    t2d = t1d.reshape(N, 1).astype(jnp.int32)

    def row_block(c, i):
        # Clamp so no block index ever falls outside the array; rows belonging
        # to a clamped duplicate are masked off in-kernel via row_id >= N.
        return (jnp.minimum(c * steps + i, n_blocks - 1), 0)

    loss_parts, cnt_parts = pl.pallas_call(
        _make_ls_kernel(int(padding_idx), float(confidence), float(low),
                        float(const_term), int(N), int(tile_n)),
        out_shape=(
            jax.ShapeDtypeStruct((num_cores, 8, 128), jnp.float32),
            jax.ShapeDtypeStruct((num_cores, 8, 128), jnp.float32),
        ),
        grid_spec=pltpu.PrefetchScalarGridSpec(
            num_scalar_prefetch=0,
            grid=(num_cores, steps),
            in_specs=[
                pl.BlockSpec((tile_n, C), row_block),
                pl.BlockSpec((tile_n, 1), row_block),
            ],
            out_specs=(
                pl.BlockSpec((1, 8, 128), lambda c, i: (c, 0, 0)),
                pl.BlockSpec((1, 8, 128), lambda c, i: (c, 0, 0)),
            ),
            scratch_shapes=[
                pltpu.VMEM((tile_n, 1), jnp.float32),
                pltpu.VMEM((tile_n, 1), jnp.float32),
            ],
        ),
        compiler_params=pltpu.CompilerParams(
            dimension_semantics=("parallel", "arbitrary"),
            vmem_limit_bytes=vmem_limit,
        ),
    )(x2d, t2d)

    loss_sum = jnp.sum(loss_parts[:, 0, 0])
    valid_cnt = jnp.sum(cnt_parts[:, 0, 0])
    return loss_sum, valid_cnt


# ----------------------------------------------------------------------------
# Module-equivalent wrapper (forward of LabelSmoothingLoss).
# Preferred calling convention: pass x in its producer dtype (bf16 welcome);
# the kernel upcasts in-register, so no wrapper-side f32 cast is needed.
# ----------------------------------------------------------------------------
def label_smoothing_loss(x, target, size, padding_idx, smoothing,
                         normalize_length=False, tile_n=None, num_cores=None):
    """x: (B, T, C) logits; target: (B, T) int ids. Returns scalar loss."""
    assert x.shape[-1] == size
    batch_size = x.shape[0]
    x2d = x.reshape(-1, size)                 # free reshape (contiguous)
    t1d = target.reshape(-1)
    loss_sum, valid_cnt = _label_smoothing_sums(
        x2d, t1d, padding_idx, smoothing, tile_n, num_cores)
    denom = valid_cnt if normalize_length else jnp.float32(batch_size)
    return loss_sum / denom


# ----------------------------------------------------------------------------
# Plain-JAX reference mirroring the PyTorch module (for a sanity check).
# ----------------------------------------------------------------------------
def _ls_ref(x, target, size, padding_idx, smoothing, normalize_length):
    batch = x.shape[0]
    x2 = x.reshape(-1, size).astype(jnp.float32)
    t = target.reshape(-1)
    low = smoothing / (size - 1)
    confidence = 1.0 - smoothing
    ignore = t == padding_idx
    total = x2.shape[0] - jnp.sum(ignore)
    t_safe = jnp.where(ignore, 0, t)
    true_dist = jnp.full_like(x2, low)
    true_dist = true_dist.at[jnp.arange(x2.shape[0]), t_safe].set(confidence)
    logp = jax.nn.log_softmax(x2, axis=-1)
    log_td = jnp.log(jnp.where(true_dist > 0, true_dist, 1.0))
    kl = jnp.where(true_dist > 0, true_dist * (log_td - logp), 0.0)
    kl = jnp.where(ignore[:, None], 0.0, kl)
    denom = total if normalize_length else batch
    return kl.sum() / denom


if __name__ == "__main__":
    padding_idx = -1
    smoothing = 0.1

    # Case 1: (B, T, C) = (2, 8, 32), padded tail targets, divide by batch.
    B, T, C = 2, 8, 32
    kx, kt = jax.random.split(jax.random.PRNGKey(0))
    x = jax.random.normal(kx, (B, T, C), dtype=jnp.float32)
    tgt = jax.random.randint(kt, (B, T), 0, C, dtype=jnp.int32)
    tgt = tgt.at[1, 5:].set(padding_idx)

    loss = label_smoothing_loss(x, tgt, C, padding_idx, smoothing,
                                normalize_length=False)
    jax.block_until_ready(loss)
    ref = _ls_ref(x, tgt, C, padding_idx, smoothing, False)
    np.testing.assert_allclose(np.asarray(loss), np.asarray(ref),
                               rtol=1e-5, atol=1e-5)

    # Case 2: normalize_length=True, N=27 rows with tile_n=16 -> exercises the
    # cdiv grid + in-kernel absolute-row mask (no HBM concat/pad of the logits).
    B2, T2, C2 = 3, 9, 40
    kx2, kt2 = jax.random.split(jax.random.PRNGKey(1))
    x2 = jax.random.normal(kx2, (B2, T2, C2), dtype=jnp.float32)
    tgt2 = jax.random.randint(kt2, (B2, T2), 0, C2, dtype=jnp.int32)
    tgt2 = tgt2.at[0, 7:].set(padding_idx)

    loss2 = label_smoothing_loss(x2, tgt2, C2, padding_idx, smoothing,
                                 normalize_length=True, tile_n=16)
    jax.block_until_ready(loss2)
    ref2 = _ls_ref(x2, tgt2, C2, padding_idx, smoothing, True)
    np.testing.assert_allclose(np.asarray(loss2), np.asarray(ref2),
                               rtol=1e-5, atol=1e-5)

    # Case 3: bf16 logits (preferred HBM-saving convention) + forced 2-core
    # grid with per-core partial outputs (the v7x megacore path); runs
    # correctly (sequentially) on 1-TC chips as well.
    B3, T3, C3 = 2, 16, 64
    kx3, kt3 = jax.random.split(jax.random.PRNGKey(2))
    x3 = jax.random.normal(kx3, (B3, T3, C3), dtype=jnp.bfloat16)
    tgt3 = jax.random.randint(kt3, (B3, T3), 0, C3, dtype=jnp.int32)
    tgt3 = tgt3.at[0, 12:].set(padding_idx)

    loss3 = label_smoothing_loss(x3, tgt3, C3, padding_idx, smoothing,
                                 normalize_length=False, tile_n=8, num_cores=2)
    jax.block_until_ready(loss3)
    ref3 = _ls_ref(x3, tgt3, C3, padding_idx, smoothing, False)
    np.testing.assert_allclose(np.asarray(loss3), np.asarray(ref3),
                               rtol=1e-4, atol=1e-4)

    print("KERNEL_OK")
</pallas_src>

<mosaic_0001>
module attributes {stable_mosaic.version = 11 : i64} {
  func.func @kernel(%arg0: i32, %arg1: i32, %arg2: memref<16x32xf32, #tpu.memory_space<vmem>>, %arg3: memref<16x1xi32, #tpu.memory_space<vmem>>, %arg4: memref<1x8x128xf32, #tpu.memory_space<vmem>>, %arg5: memref<1x8x128xf32, #tpu.memory_space<vmem>>, %arg6: memref<16x1xf32, #tpu.memory_space<vmem>>, %arg7: memref<16x1xf32, #tpu.memory_space<vmem>>) attributes {dimension_semantics = [#tpu.dimension_semantics<parallel>, #tpu.dimension_semantics<arbitrary>], iteration_bounds = array<i64: 1, 1>, scalar_prefetch = 0 : i64, scratch_operands = 2 : i64, tpu.core_type = #tpu.core_type<tc>, window_params = [{transform_indices = @transform_0, window_bounds = array<i64: 16, 32>}, {transform_indices = @transform_1, window_bounds = array<i64: 16, 1>}, {transform_indices = @transform_2, window_bounds = array<i64: 1, 8, 128>}, {transform_indices = @transform_3, window_bounds = array<i64: 1, 8, 128>}]} {
    %c0_i32 = arith.constant 0 : i32
    %0 = arith.cmpi eq, %arg1, %c0_i32 : i32
    %1 = arith.extui %0 : i1 to i32
    %c0_i32_0 = arith.constant 0 : i32
    %2 = arith.cmpi ne, %1, %c0_i32_0 : i32
    scf.if %2 {
      %cst_21 = arith.constant 0.000000e+00 : f32
      %50 = vector.broadcast %cst_21 : f32 to vector<16x1xf32>
      %c0_22 = arith.constant 0 : index
      %c0_23 = arith.constant 0 : index
      %51 = vector.load %arg6[%c0_22, %c0_23] : memref<16x1xf32, #tpu.memory_space<vmem>>, vector<16x1xf32>
      tpu.vector_store %arg6[%c0_22, %c0_23], %50 {strides = array<i32>} : memref<16x1xf32, #tpu.memory_space<vmem>>, vector<16x1xf32>,
      %cst_24 = arith.constant 0.000000e+00 : f32
      %52 = vector.broadcast %cst_24 : f32 to vector<16x1xf32>
      %c0_25 = arith.constant 0 : index
      %c0_26 = arith.constant 0 : index
      %53 = vector.load %arg7[%c0_25, %c0_26] : memref<16x1xf32, #tpu.memory_space<vmem>>, vector<16x1xf32>
      tpu.vector_store %arg7[%c0_25, %c0_26], %52 {strides = array<i32>} : memref<16x1xf32, #tpu.memory_space<vmem>>, vector<16x1xf32>,
    } else {
    }
    %c0 = arith.constant 0 : index
    %c0_1 = arith.constant 0 : index
    %3 = vector.load %arg2[%c0, %c0_1] : memref<16x32xf32, #tpu.memory_space<vmem>>, vector<16x32xf32>
    %c0_2 = arith.constant 0 : index
    %c0_3 = arith.constant 0 : index
    %4 = vector.load %arg3[%c0_2, %c0_3] : memref<16x1xi32, #tpu.memory_space<vmem>>, vector<16x1xi32>
    %cst = arith.constant dense<0xFF800000> : vector<16xf32>
    %5 = vector.multi_reduction <maximumf>, %3, %cst [1] : vector<16x32xf32> to vector<16xf32>
    %6 = vector.shape_cast %5 : vector<16xf32> to vector<16x1xf32>
    %7 = vector.broadcast %6 : vector<16x1xf32> to vector<16x32xf32>
    %8 = arith.subf %3, %7 : vector<16x32xf32>
    %9 = math.exp %8 : vector<16x32xf32>
    %cst_4 = arith.constant dense<0.000000e+00> : vector<16xf32>
    %10 = vector.multi_reduction <add>, %9, %cst_4 [1] : vector<16x32xf32> to vector<16xf32>
    %11 = vector.shape_cast %10 : vector<16xf32> to vector<16x1xf32>
    %12 = math.log %11 : vector<16x1xf32>
    %13 = arith.addf %6, %12 : vector<16x1xf32>
    %14 = tpu.iota {dimensions = array<i32: 1>} : vector<16x32xi32>
    %15 = vector.broadcast %4 : vector<16x1xi32> to vector<16x32xi32>
    %16 = arith.cmpi eq, %14, %15 : vector<16x32xi32>
    %cst_5 = arith.constant 0.899999976 : f32
    %cst_6 = arith.constant 0.0032258064 : f32
    %17 = vector.broadcast %cst_5 : f32 to vector<16x32xf32>
    %18 = vector.broadcast %cst_6 : f32 to vector<16x32xf32>
    %19 = arith.select %16, %17, %18 : vector<16x32xi1>, vector<16x32xf32>
    %20 = arith.mulf %19, %3 : vector<16x32xf32>
    %cst_7 = arith.constant dense<0.000000e+00> : vector<16xf32>
    %21 = vector.multi_reduction <add>, %20, %cst_7 [1] : vector<16x32xf32> to vector<16xf32>
    %22 = vector.shape_cast %21 : vector<16xf32> to vector<16x1xf32>
    %cst_8 = arith.constant -0.668481708 : f32
    %23 = vector.broadcast %cst_8 : f32 to vector<16x1xf32>
    %24 = arith.addf %23, %13 : vector<16x1xf32>
    %25 = arith.subf %24, %22 : vector<16x1xf32>
    %c1_i32 = arith.constant 1 : i32
    %26 = arith.muli %arg0, %c1_i32 : i32
    %27 = arith.addi %26, %arg1 : i32
    %c16_i32 = arith.constant 16 : i32
    %28 = arith.muli %27, %c16_i32 : i32
    %29 = tpu.iota {dimensions = array<i32: 0>} : vector<16x1xi32>
    %30 = vector.broadcast %28 : i32 to vector<16x1xi32>
    %31 = arith.addi %30, %29 : vector<16x1xi32>
    %c-1_i32 = arith.constant -1 : i32
    %32 = vector.broadcast %c-1_i32 : i32 to vector<16x1xi32>
    %33 = arith.cmpi ne, %4, %32 : vector<16x1xi32>
    %c16_i32_9 = arith.constant 16 : i32
    %34 = vector.broadcast %c16_i32_9 : i32 to vector<16x1xi32>
    %35 = arith.cmpi slt, %31, %34 : vector<16x1xi32>
    %36 = arith.andi %33, %35 : vector<16x1xi1>
    %c0_10 = arith.constant 0 : index
    %c0_11 = arith.constant 0 : index
    %37 = vector.load %arg6[%c0_10, %c0_11] : memref<16x1xf32, #tpu.memory_space<vmem>>, vector<16x1xf32>
    %cst_12 = arith.constant 0.000000e+00 : f32
    %38 = vector.broadcast %cst_12 : f32 to vector<16x1xf32>
    %39 = arith.select %36, %25, %38 : vector<16x1xi1>, vector<16x1xf32>
    %40 = arith.addf %37, %39 : vector<16x1xf32>
    %c0_13 = arith.constant 0 : index
    %c0_14 = arith.constant 0 : index
    %41 = vector.load %arg6[%c0_13, %c0_14] : memref<16x1xf32, #tpu.memory_space<vmem>>, vector<16x1xf32>
    tpu.vector_store %arg6[%c0_13, %c0_14], %40 {strides = array<i32>} : memref<16x1xf32, #tpu.memory_space<vmem>>, vector<16x1xf32>,
    %c0_15 = arith.constant 0 : index
    %c0_16 = arith.constant 0 : index
    %42 = vector.load %arg7[%c0_15, %c0_16] : memref<16x1xf32, #tpu.memory_space<vmem>>, vector<16x1xf32>
    %43 = arith.extui %36 : vector<16x1xi1> to vector<16x1xi32>
    %44 = arith.sitofp %43 : vector<16x1xi32> to vector<16x1xf32>
    %45 = arith.addf %42, %44 : vector<16x1xf32>
    %c0_17 = arith.constant 0 : index
    %c0_18 = arith.constant 0 : index
    %46 = vector.load %arg7[%c0_17, %c0_18] : memref<16x1xf32, #tpu.memory_space<vmem>>, vector<16x1xf32>
    tpu.vector_store %arg7[%c0_17, %c0_18], %45 {strides = array<i32>} : memref<16x1xf32, #tpu.memory_space<vmem>>, vector<16x1xf32>,
    %c0_i32_19 = arith.constant 0 : i32
    %47 = arith.cmpi eq, %arg1, %c0_i32_19 : i32
    %48 = arith.extui %47 : i1 to i32
    %c0_i32_20 = arith.constant 0 : i32
    %49 = arith.cmpi ne, %48, %c0_i32_20 : i32
    scf.if %49 {
      %c0_21 = arith.constant 0 : index
      %c0_22 = arith.constant 0 : index
      %50 = vector.load %arg6[%c0_21, %c0_22] : memref<16x1xf32, #tpu.memory_space<vmem>>, vector<16x1xf32>
      %51 = vector.shape_cast %50 : vector<16x1xf32> to vector<1x16x1xf32>
      %cst_23 = arith.constant dense<0.000000e+00> : vector<1xf32>
      %52 = vector.multi_reduction <add>, %51, %cst_23 [1, 2] : vector<1x16x1xf32> to vector<1xf32>
      %53 = vector.shape_cast %52 : vector<1xf32> to vector<1x1x1xf32>
      %54 = vector.extract %53[0, 0, 0] : f32 from vector<1x1x1xf32>
      %55 = vector.broadcast %54 : f32 to vector<1x1xf32>
      %c0_24 = arith.constant 0 : index
      %c0_25 = arith.constant 0 : index
      %56 = vector.load %arg7[%c0_24, %c0_25] : memref<16x1xf32, #tpu.memory_space<vmem>>, vector<16x1xf32>
      %57 = vector.shape_cast %56 : vector<16x1xf32> to vector<1x16x1xf32>
      %cst_26 = arith.constant dense<0.000000e+00> : vector<1xf32>
      %58 = vector.multi_reduction <add>, %57, %cst_26 [1, 2] : vector<1x16x1xf32> to vector<1xf32>
      %59 = vector.shape_cast %58 : vector<1xf32> to vector<1x1x1xf32>
      %60 = vector.extract %59[0, 0, 0] : f32 from vector<1x1x1xf32>
      %61 = vector.broadcast %60 : f32 to vector<1x1xf32>
      %62 = vector.shape_cast %55 : vector<1x1xf32> to vector<1x1x1xf32>
      %63 = vector.shape_cast %62 : vector<1x1x1xf32> to vector<1x1x1xf32>
      %64 = vector.broadcast %63 : vector<1x1x1xf32> to vector<1x8x128xf32>
      %c0_27 = arith.constant 0 : index
      %c0_28 = arith.constant 0 : index
      %c0_29 = arith.constant 0 : index
      %65 = vector.load %arg4[%c0_27, %c0_28, %c0_29] : memref<1x8x128xf32, #tpu.memory_space<vmem>>, vector<1x8x128xf32>
      tpu.vector_store %arg4[%c0_27, %c0_28, %c0_29], %64 {strides = array<i32>} : memref<1x8x128xf32, #tpu.memory_space<vmem>>, vector<1x8x128xf32>,
      %66 = vector.shape_cast %61 : vector<1x1xf32> to vector<1x1x1xf32>
      %67 = vector.shape_cast %66 : vector<1x1x1xf32> to vector<1x1x1xf32>
      %68 = vector.broadcast %67 : vector<1x1x1xf32> to vector<1x8x128xf32>
      %c0_30 = arith.constant 0 : index
      %c0_31 = arith.constant 0 : index
      %c0_32 = arith.constant 0 : index
      %69 = vector.load %arg5[%c0_30, %c0_31, %c0_32] : memref<1x8x128xf32, #tpu.memory_space<vmem>>, vector<1x8x128xf32>
      tpu.vector_store %arg5[%c0_30, %c0_31, %c0_32], %68 {strides = array<i32>} : memref<1x8x128xf32, #tpu.memory_space<vmem>>, vector<1x8x128xf32>,
    } else {
    }
    return
  }
  func.func @transform_0(%arg0: i32, %arg1: i32) -> (i32, i32) {
    %c1_i32 = arith.constant 1 : i32
    %0 = arith.muli %arg0, %c1_i32 : i32
    %1 = arith.addi %0, %arg1 : i32
    %c0_i32 = arith.constant 0 : i32
    %2 = arith.minsi %1, %c0_i32 : i32
    %c0_i32_0 = arith.constant 0 : i32
    %c0_i32_1 = arith.constant 0 : i32
    return %2, %c0_i32_0 : i32, i32
  }
  func.func @transform_1(%arg0: i32, %arg1: i32) -> (i32, i32) {
    %c1_i32 = arith.constant 1 : i32
    %0 = arith.muli %arg0, %c1_i32 : i32
    %1 = arith.addi %0, %arg1 : i32
    %c0_i32 = arith.constant 0 : i32
    %2 = arith.minsi %1, %c0_i32 : i32
    %c0_i32_0 = arith.constant 0 : i32
    %c0_i32_1 = arith.constant 0 : i32
    return %2, %c0_i32_0 : i32, i32
  }
  func.func @transform_2(%arg0: i32, %arg1: i32) -> (i32, i32, i32) {
    %c0_i32 = arith.constant 0 : i32
    %c0_i32_0 = arith.constant 0 : i32
    %c0_i32_1 = arith.constant 0 : i32
    return %arg0, %c0_i32, %c0_i32_0 : i32, i32, i32
  }
  func.func @transform_3(%arg0: i32, %arg1: i32) -> (i32, i32, i32) {
    %c0_i32 = arith.constant 0 : i32
    %c0_i32_0 = arith.constant 0 : i32
    %c0_i32_1 = arith.constant 0 : i32
    return %arg0, %c0_i32, %c0_i32_0 : i32, i32, i32
  }
}

</mosaic_0001>

<bundles_post_ra>
// kernel: tpu_custom_call.1
= control target key start
LH: loop header
LB: loop body
LE: loop exit
PB: predicated region body
PF: predicated region fallthrough
CT: control target
= control target key end

     0   :  { %9 = vsyncpa [#allocation5], 0  ;;  %vm92_vm0 = vcmask 261120   ;;  %vm83_vm1 = vcmask 7168   ;;  %v318_v4 = vmov 0   ;;  %v319_v5 = vmov 0.0   ;;  %s413_s0 = inlined_call_operand.vmem [shape: f32[16,32], index: 0, kind: input, shape index: {}]   ;;  %s414_s1 = inlined_call_operand.vmem [shape: s32[16,1], index: 1, kind: input, shape index: {}]   ;;  %s415_s2 = inlined_call_operand.hbm [shape: f32[1,8,128], index: 2, kind: output, shape index: {0}]   ;;  %s416_s3 = inlined_call_operand.hbm [shape: f32[1,8,128], index: 3, kind: output, shape index: {1}]  }
   0x1   :  { %v88_v0 = vld [vmem:[%s413_s0] sm:$0xff]  ;;  %v89_v1 = vld [vmem:[%s413_s0 + $0x8] sm:$0xff]  ;;  %260 = vset.pattern.permute.xlu1 %v318_v4  ;;  %261 = vset.pattern.permute.xlu0 %v318_v4  ;;  %86 = vst.msk [vmem:[#allocation3] sm:$0xff] %vm83_vm1, %v319_v5  ;;  %84 = vst.msk [vmem:[#allocation2] sm:$0xff] %vm83_vm1, %v319_v5 }
   0x2   :  { %v352_v2 = vld [vmem:[%s414_s1] sm:$0xff]  ;;  %v93_v3 = vsel %vm92_vm0, %v88_v0, -inf  ;;  %85 = vst.msk [vmem:[#allocation2 + $0x8] sm:$0xff] %vm83_vm1, %v319_v5  ;;  %87 = vst.msk [vmem:[#allocation3 + $0x8] sm:$0xff] %vm83_vm1, %v319_v5 }
   0x3   :  { %94 = vmax.xlane.f32.xlu0 %v93_v3  ;;  %120 = vperm.xlu1 %260, %v352_v2  }
   0x4   :  { %10 = vsyncpa [#allocation7], 0  ;;  %v96_v6 = vsel %vm92_vm0, %v89_v1, -inf  ;;  %v364_v7 = vld [vmem:[%s414_s1 + $0x8] sm:$0xff]  ;;  %vm149_vm2 = vcmp.ne.s32.totalorder %v352_v2, 4294967295  ;;  %v117_v15 = vlaneseq  ;;  %s321_s1 = smov [#allocation4]  }
   0x5   :  { %vm150_vm3 = vcmp.ne.s32.totalorder %v364_v7, 4294967295  ;;  %v249_v8 = vsel %vm149_vm2, 1.0, %v319_v5  ;;  %v320_v24 = vmov 0.0032258064   ;;  %s215_s19 = sshll.u32 %s321_s1, 4  ;;  %s322_s21 = smov [#allocation6]   ;;  %s216_s19 = int_to_ptr.vmem [resolvable:$true] %s215_s19 }
   0x6   :  { %v250_v9 = vsel %vm150_vm3, 1.0, %v319_v5  ;;  %v118_v20 = vand.u32 127, %v117_v15  ;;  %s225_s22 = sshll.u32 %s322_s21, 4  ;;  %s270_s23 = scalar_lea.vmem %s216_s19, 128  ;;  %s226_s22 = int_to_ptr.vmem [resolvable:$true] %s225_s22 }
   0x7   :  { %97 = vmax.xlane.f32.xlu0 %v96_v6  ;;  %123 = vperm.xlu1 %260, %v364_v7   ;;  %p271_p0 = scmp.ne.s32.totalorder %s216_s19, %s270_s23  ;;  %p275_p1 = scmp.lt.s32.totalorder %s216_s19, %s216_s19 }
   0x8   :  { %v164_v10 = vld [vmem:[#allocation3] sm:$0xff]  ;;  %v155_v45 = vld [vmem:[#allocation2] sm:$0xff]  ;;  %p276_p2 = scmp.lt.s32.totalorder %s270_s23, %s270_s23 }
   0x9   :  { %v165_v11 = vld [vmem:[#allocation3 + $0x8] sm:$0xff]  ;;  %v170_v12 = vadd.f32 %v249_v8, %v164_v10  ;;  %v156_v52 = vld [vmem:[#allocation2 + $0x8] sm:$0xff] }
   0xa   :  { %v171_v13 = vadd.f32 %v250_v9, %v165_v11  ;;  %p277_p3 = por %p276_p2, %p275_p1 }
   0xb   :  { %172 = vst.msk [vmem:[#allocation3] sm:$0xff] %vm83_vm1, %v170_v12 }
   0xc   :  { %173 = vst.msk [vmem:[#allocation3 + $0x8] sm:$0xff] %vm83_vm1, %v171_v13  ;;  %p278_p4 = pnand %p277_p3, %p271_p0 }
  0x12   :  { %v191_v56 = vld [vmem:[#allocation3] sm:$0xff] }
  0x13   :  { %v192_v57 = vld [vmem:[#allocation3 + $0x8] sm:$0xff]  ;;  %v193_v61 = vsel %vm83_vm1, %v191_v56, 0.0 }
  0x14   :  { %v194_v62 = vsel %vm83_vm1, %v192_v57, 0.0 }
  0x82   :  { %v121_v18 = vpop.permute.xlu1 %120 }
  0x83   :  { %vm125_vm4 = vcmp.eq.s32.totalorder %v118_v20, %v121_v18 }
  0x84   :  { %v127_v25 = vsel %vm125_vm4, 0.9, %v320_v24 }
  0x85   :  { %v129_v26 = vmul.f32 %v127_v25, %v88_v0 }
  0x86   :  { %v124_v23 = vpop.permute.xlu1 %123 }
  0x87   :  { %vm126_vm5 = vcmp.eq.s32.totalorder %v118_v20, %v124_v23  ;;  %v131_v30 = vsel %vm92_vm0, %v129_v26, 0.0 }
  0x88   :  { %v128_v28 = vsel %vm126_vm5, 0.9, %v320_v24 }
  0x89   :  { %v130_v31 = vmul.f32 %v128_v28, %v89_v1 }
  0x8b   :  { %v134_v34 = vsel %vm92_vm0, %v130_v31, 0.0 }
  0x90   :  { %v95_v14 = vpop.xlane.xlu0 %94 }
  0x91   :  { %v99_v16 = vsub.f32 %v88_v0, %v95_v14  ;;  %v195_v0 = vadd.f32 %v194_v62, %v193_v61 }
  0x93   :  { %v101_v17 = vmul.f32 1.442695, %v99_v16 }
  0x94   :  { %v98_v19 = vpop.xlane.xlu0 %97 }
  0x95   :  { %262 = vpow2.f32 %v101_v17  ;;  %v100_v21 = vsub.f32 %v89_v1, %v98_v19 }
  0x97   :  { %v103_v22 = vmul.f32 1.442695, %v100_v21 }
  0x99   :  { %264 = vpow2.f32 %v103_v22 }
  0x9f   :  { %v263_v27 = vpop.eup %262 }
  0xa0   :  { %v105_v29 = vsel %vm92_vm0, %v263_v27, 0.0 }
  0xa1   :  { %106 = vadd.xlane.f32.xlu0 %v105_v29 }
  0xa3   :  { %v265_v32 = vpop.eup %264 }
  0xa4   :  { %v108_v33 = vsel %vm92_vm0, %v265_v32, 0.0 }
  0xa5   :  { %109 = vadd.xlane.f32.xlu1 %v108_v33  ;;  %132 = vadd.xlane.f32.xlu0 %v131_v30 }
  0xa9   :  { %135 = vadd.xlane.f32.xlu0 %v134_v34 }
 0x12e   :  { %v107_v35 = vpop.xlane.xlu0 %106 }
 0x12f   :  { %266 = vlog2.f32 %v107_v35 }
 0x132   :  { %v110_v36 = vpop.xlane.xlu1 %109  ;;  %v133_v41 = vpop.xlane.xlu0 %132 }
 0x133   :  { %268 = vlog2.f32 %v110_v36 }
 0x136   :  { %v136_v50 = vpop.xlane.xlu0 %135 }
 0x139   :  { %v267_v37 = vpop.eup %266 }
 0x13a   :  { %v112_v38 = vmul.f32 0.6931472, %v267_v37 }
 0x13c   :  { %v115_v39 = vadd.f32 %v112_v38, %v95_v14 }
 0x13d   :  { %v269_v40 = vpop.eup %268 }
 0x13e   :  { %v114_v42 = vmul.f32 0.6931472, %v269_v40  ;;  %v137_v43 = vadd.f32 -0.6684817, %v115_v39 }
 0x140   :  { %v139_v44 = vsub.f32 %v137_v43, %v133_v41  ;;  %v116_v46 = vadd.f32 %v114_v42, %v98_v19 }
 0x142   :  { %v157_v47 = vsel %vm149_vm2, %v139_v44, 0.0  ;;  %v138_v48 = vadd.f32 -0.6684817, %v116_v46 }
 0x143   :  { %v159_v49 = vadd.f32 %v157_v47, %v155_v45 }
 0x144   :  { %v140_v51 = vsub.f32 %v138_v48, %v136_v50 }
 0x145   :  { %162 = vst.msk [vmem:[#allocation2] sm:$0xff] %vm83_vm1, %v159_v49 }
 0x146   :  { %v158_v53 = vsel %vm150_vm3, %v140_v51, 0.0 }
 0x147   :  { %v160_v54 = vadd.f32 %v158_v53, %v156_v52 }
 0x149   :  { %163 = vst.msk [vmem:[#allocation2 + $0x8] sm:$0xff] %vm83_vm1, %v160_v54 }
 0x14c   :  { %v177_v55 = vld [vmem:[#allocation2] sm:$0xff] }
 0x14d   :  { %v179_v59 = vsel %vm83_vm1, %v177_v55, 0.0 }
 0x150   :  { %v178_v58 = vld [vmem:[#allocation2 + $0x8] sm:$0xff] }
 0x151   :  { %v180_v60 = vsel %vm83_vm1, %v178_v58, 0.0 }
 0x152   :  { %v181_v63 = vadd.f32 %v180_v60, %v179_v59 }
 0x154   :  { %182 = vadd.xlane.f32.xlu0 %v181_v63 }
 0x158   :  { %196 = vadd.xlane.f32.xlu0 %v195_v0 }
 0x1e1   :  { %v183_v1 = vpop.xlane.xlu0 %182 }
 0x1e2   :  { %v184_v2 = vrot.slane %v183_v1, 4 }
 0x1e4   :  { %v185_v3 = vadd.f32 %v184_v2, %v183_v1 }
 0x1e5   :  { %v197_v4 = vpop.xlane.xlu0 %196 }
 0x1e6   :  { %v186_v5 = vrot.slane %v185_v3, 2  ;;  %v198_v6 = vrot.slane %v197_v4, 4 }
 0x1e8   :  { %v199_v7 = vadd.f32 %v198_v6, %v197_v4  ;;  %v187_v8 = vadd.f32 %v186_v5, %v185_v3 }
 0x1ea   :  { %v200_v9 = vrot.slane %v199_v7, 2  ;;  %v188_v10 = vrot.slane %v187_v8, 1 }
 0x1ec   :  { %v201_v11 = vadd.f32 %v200_v9, %v199_v7  ;;  %v189_v12 = vadd.f32 %v188_v10, %v187_v8 }
 0x1ee   :  { %251 = vpush %v189_v12  ;;  %v202_v13 = vrot.slane %v201_v11, 1 }
 0x1f0   :  { %v203_v14 = vadd.f32 %v202_v13, %v201_v11 }
 0x1f2   :  { %253 = vpush %v203_v14 }
 0x21f   :  { %s252_s20 = spop %251 }
 0x220   :  { %v205_v15 = vstv %s252_s20 }
 0x221   :  { %206 = vst [vmem:[#allocation4] sm:$0xff] %v205_v15 }
 0x222   :  { %281 = shalt.err (!%p278_p4)
}
 0x223   :  { %s282_s26 = scalar_lea.hbm %s415_s2, 128 }
 0x224   :  { %p283_p5 = scmp.ne.s32.totalorder %s415_s2, %s282_s26  ;;  %p286_p6 = scmp.lt.u32.totalorder %s282_s26, %s415_s2 }
 0x226   :  { %p288_p7 = pnand %p286_p6, %p283_p5 }
 0x228   :  { %291 = shalt.err (!%p288_p7)
}
 0x229   :  { %218 = dma.vmem_to_hbm [thread:$0]  %s216_s19, 128, %s415_s2, [#allocation5]  }
 0x22a   :  { %s254_s6 = spop %253  ;;  %s292_s7 = scalar_lea.vmem %s226_s22, 128 }
 0x22b   :  { %v207_v16 = vstv %s254_s6  ;;  %p293_p8 = scmp.ne.s32.totalorder %s226_s22, %s292_s7  ;;  %p297_p9 = scmp.lt.s32.totalorder %s226_s22, %s226_s22 }
 0x22c   :  { %208 = vst [vmem:[#allocation6] sm:$0xff] %v207_v16  ;;  %p298_p10 = scmp.lt.s32.totalorder %s292_s7, %s292_s7 }
 0x22e   :  { %p299_p11 = por %p298_p10, %p297_p9 }
 0x230   :  { %p300_p12 = pnand %p299_p11, %p293_p8 }
 0x232   :  { %303 = shalt.err (!%p300_p12)
}
 0x233   :  { %s304_s10 = scalar_lea.hbm %s416_s3, 128 }
 0x234   :  { %p305_p13 = scmp.ne.s32.totalorder %s416_s3, %s304_s10  ;;  %p308_p0 = scmp.lt.u32.totalorder %s304_s10, %s416_s3 }
 0x236   :  { %p310_p1 = pnand %p308_p0, %p305_p13 }
 0x238   :  { %313 = shalt.err (!%p310_p1)
}
 0x239   :  { %228 = dma.vmem_to_hbm [thread:$0]  %s226_s22, 128, %s416_s3, [#allocation7]  }
 0x23a   :  { %314 = dma.done.wait [#allocation5], 128  }
 0x23b   :  { %315 = vsyncadd [#allocation5], 4294967168 }
 0x23c   :  { %316 = dma.done.wait [#allocation7], 128  }
 0x23d   :  { %317 = vsyncadd [#allocation7], 4294967168 }
 0x23e   :  { %235 = vsyncpa [#allocation5], 1 }
 0x23f   :  { %236 = vsyncpa [#allocation7], 1 }

</bundles_post_ra>
